<compile_context>
chip_gen: v5e
topology: v5e:2x2
jax: 0.10.0
libtpu: 0.0.40
codegen_flags: <defaults>
</compile_context>

<pallas_src>
import functools

import jax
import jax.numpy as jnp
from jax.experimental import pallas as pl
from jax.experimental.pallas import tpu as pltpu


def _nce_kernel(*refs, c, g, n_rows, tile_rows):
    # refs = (x_ref, xlab_ref[, seg_ref], out_ref)
    #   x_ref    : (TN, G*C) logits tile (caller dtype)   [VMEM]
    #   xlab_ref : (TN, G)   x[label] per packed sample   [VMEM]
    #   seg_ref  : (G*C, G)  0/1 segment indicator (only when g > 1)
    #   out_ref  : (1, 8, 128) f32 partial-sum block (psum at [0,0,0])
    if g > 1:
        x_ref, xlab_ref, seg_ref, out_ref = refs
    else:
        x_ref, xlab_ref, out_ref = refs
        seg_ref = None

    i = pl.program_id(0)
    x = x_ref[...].astype(jnp.float32)                        # (TN, GC)
    tn, gc = x.shape

    # Mask padding rows of a ragged last tile *before* any reduction so no
    # garbage (potential inf/NaN) ever reaches max/exp/log.
    row_ids = i * tile_rows + jax.lax.broadcasted_iota(jnp.int32, (tn, 1), 0)
    row_valid = row_ids < n_rows                              # (TN, 1) bool
    x = jnp.where(row_valid, x, 0.0)

    # Shared per-physical-row max: exact logsumexp identity, exp(x - m) <= 1.
    # (Could underflow only if packed samples' logit scales differ by >~80.)
    m = jnp.max(x, axis=1, keepdims=True)                     # (TN, 1)
    e = jnp.exp(x - m)                                        # (TN, GC) one exp/elem

    if g > 1:
        # Segmented sums over C-lane segments via the idle MXU.
        seg = seg_ref[...]                                    # (GC, G) f32 0/1
        sum_e = jnp.dot(e, seg, preferred_element_type=jnp.float32)  # (TN, G)
        sum_x = jnp.dot(x, seg, preferred_element_type=jnp.float32)  # (TN, G)
    else:
        sum_e = jnp.sum(e, axis=1, keepdims=True)             # (TN, 1)
        sum_x = jnp.sum(x, axis=1, keepdims=True)             # (TN, 1)

    lse = m + jnp.log(sum_e)                                  # (TN, G) one log/sample
    x_lab = jnp.where(row_valid, xlab_ref[...].astype(jnp.float32), 0.0)

    num = lse - x_lab                                         # -log_softmax[label]
    den = jnp.float32(c) * lse - sum_x                        # -sum_c log_softmax
    loss = jnp.where(row_valid, num / den, 0.0)               # (TN, G)

    psum = jnp.sum(loss, axis=(0, 1), keepdims=True)          # (1, 1) tile partial

    # Lane-dense (8,128) output block; partial sum in element [0,0], zeros
    # elsewhere -> wrapper just sums the whole output.
    r = jax.lax.broadcasted_iota(jnp.int32, (1, 8, 128), 1)
    l = jax.lax.broadcasted_iota(jnp.int32, (1, 8, 128), 2)
    out_ref[...] = jnp.where((r == 0) & (l == 0), psum, 0.0)


def _pick_tile_rows(n_packed, packed_c, g, itemsize):
    """Rows per tile + explicit VMEM limit, from dtype + f32 working set."""
    try:
        vmem_cap = int(pltpu.get_tpu_info().vmem_capacity_bytes)
    except Exception:
        vmem_cap = 64 * 1024 * 1024          # conservative (v7x per-core size)
    # Scoped VMEM we request from Mosaic: 3/4 of physical, capped at 96 MiB
    # (v5e/v6e: 96 MiB, v7x: 48 MiB).
    vmem_limit = max(16 * 1024 * 1024, min(vmem_cap * 3 // 4, 96 * 1024 * 1024))

    # Peak per-step bytes per packed row:
    #   2x double-buffered input tile + ~4 f32 (TN,GC) temporaries
    #   (f32 cast, masked x, x-m, exp) + small (TN,G) columns.
    per_row = 2 * packed_c * itemsize + 4 * packed_c * 4 + 6 * g * 4 + 32
    budget = vmem_limit // 2                                  # keep headroom
    tn_ws = max(1, budget // per_row)
    # Keep one input tile's DMA in the multi-MiB range: beyond ~8 MiB the
    # ~0.35 us per-grid-step overhead is already well under 1% of the DMA.
    tn_bytes = max(1, (8 * 1024 * 1024) // (packed_c * itemsize))

    tn = min(n_packed, tn_ws, tn_bytes)
    if tn < n_packed:
        tn = max(8, (tn // 8) * 8)           # tiled rows need sublane multiple of 8
    return tn, vmem_limit


def nce_loss(pred, labels, *, num_classes=None, scale=1.0, tile_rows=None):
    """pred: (N, C) float logits (any float dtype); labels: (N,) int class ids."""
    n, c = pred.shape
    if num_classes is not None and num_classes != c:
        raise ValueError(f"num_classes={num_classes} must equal pred.shape[1]={c}")
    labels = labels.astype(jnp.int32)

    # x[label] per sample: O(N) gather done by XLA (negligible vs the O(N*C)
    # logits read) — layout plumbing that removes all one-hot work in-kernel.
    x_label = jnp.take_along_axis(pred, labels[:, None], axis=1)      # (N, 1)

    # Lane-dense packing for small C: largest G <= 128//C that divides N so the
    # row-major reshape is free (metadata only, no padding copy).
    g = max(1, 128 // c)
    while g > 1 and n % g != 0:
        g -= 1
    n_packed, gc = n // g, g * c
    x_p = pred.reshape(n_packed, gc)
    xl_p = x_label.reshape(n_packed, g)

    tn, vmem_limit = _pick_tile_rows(n_packed, gc, g, pred.dtype.itemsize)
    if tile_rows is not None:                # test hook to force multi-tile path
        tn = min(int(tile_rows), n_packed)
        if tn < n_packed:
            tn = max(8, (tn // 8) * 8)
    num_tiles = pl.cdiv(n_packed, tn)

    kernel = functools.partial(_nce_kernel, c=c, g=g, n_rows=n_packed, tile_rows=tn)

    in_specs = [
        pl.BlockSpec((tn, gc), lambda i: (i, 0)),   # logits rows (caller dtype)
        pl.BlockSpec((tn, g), lambda i: (i, 0)),    # x[label] per packed sample
    ]
    args = [x_p, xl_p]
    if g > 1:
        # (GC, G) block-indicator: seg[j, k] = 1 iff lane j belongs to segment k.
        seg = (jnp.arange(gc, dtype=jnp.int32)[:, None] // c
               == jnp.arange(g, dtype=jnp.int32)[None, :]).astype(jnp.float32)
        in_specs.append(pl.BlockSpec((gc, g), lambda i: (0, 0)))  # DMA'd once
        args.append(seg)

    partials = pl.pallas_call(
        kernel,
        out_shape=jax.ShapeDtypeStruct((num_tiles, 8, 128), jnp.float32),
        grid_spec=pltpu.PrefetchScalarGridSpec(
            num_scalar_prefetch=0,
            grid=(num_tiles,),
            in_specs=in_specs,
            out_specs=pl.BlockSpec((1, 8, 128), lambda i: (i, 0, 0)),
        ),
        compiler_params=pltpu.CompilerParams(
            dimension_semantics=("parallel",),      # independent tiles -> megacore OK
            vmem_limit_bytes=int(vmem_limit),
        ),
    )(*args)

    # Tiny final reduction + normalization in the wrapper.
    return (jnp.sum(partials) * jnp.float32(scale / n)).astype(jnp.float32)


def _nce_ref(pred, labels, num_classes, scale=1.0):
    lp = jax.nn.log_softmax(pred.astype(jnp.float32), axis=1)
    oh = jax.nn.one_hot(labels, num_classes, dtype=jnp.float32)
    num = -jnp.sum(oh * lp, axis=1)
    den = -jnp.sum(lp, axis=1)
    return scale * jnp.mean(num / den)


if __name__ == "__main__":
    key = jax.random.PRNGKey(0)
    k1, k2, k3, k4, k5, k6 = jax.random.split(key, 6)

    # 1) Small shape from the module spec: (batch, num_classes) logits.
    batch, nc = 8, 10
    pred = jax.random.normal(k1, (batch, nc), dtype=jnp.float32)
    labels = jax.random.randint(k2, (batch,), 0, nc, dtype=jnp.int32)
    out = nce_loss(pred, labels, num_classes=nc, scale=1.0)
    jax.block_until_ready(out)
    ref = _nce_ref(pred, labels, nc, 1.0)
    assert jnp.allclose(out, ref, rtol=2e-5, atol=1e-6), (out, ref)

    # 2) Lane-packed (G=5) + forced multi-tile + ragged last tile + masking.
    pred2 = jax.random.normal(k3, (1030, 16), dtype=jnp.float32)
    labels2 = jax.random.randint(k4, (1030,), 0, 16, dtype=jnp.int32)
    out2 = nce_loss(pred2, labels2, num_classes=16, scale=0.5, tile_rows=64)
    jax.block_until_ready(out2)
    ref2 = _nce_ref(pred2, labels2, 16, 0.5)
    assert jnp.allclose(out2, ref2, rtol=1e-4, atol=1e-5), (out2, ref2)

    # 3) Unpacked path (C = 128 -> G = 1: plain lane reductions, no seg input).
    pred3 = jax.random.normal(k5, (64, 128), dtype=jnp.float32)
    labels3 = jax.random.randint(k6, (64,), 0, 128, dtype=jnp.int32)
    out3 = nce_loss(pred3, labels3, num_classes=128)
    jax.block_until_ready(out3)
    ref3 = _nce_ref(pred3, labels3, 128, 1.0)
    assert jnp.allclose(out3, ref3, rtol=1e-4, atol=1e-5), (out3, ref3)

    # 4) bf16 logits: dtype-aware tiling, bf16 over HBM, f32 compute in-kernel.
    pred4 = jax.random.normal(k1, (40, 12), dtype=jnp.float32).astype(jnp.bfloat16)
    labels4 = jax.random.randint(k2, (40,), 0, 12, dtype=jnp.int32)
    out4 = nce_loss(pred4, labels4, num_classes=12)
    jax.block_until_ready(out4)
    ref4 = _nce_ref(pred4, labels4, 12, 1.0)
    assert jnp.allclose(out4, ref4, rtol=1e-4, atol=1e-5), (out4, ref4)

    print("KERNEL_OK")
</pallas_src>

<mosaic_0001>
module attributes {stable_mosaic.version = 11 : i64} {
  func.func @_nce_kernel(%arg0: i32, %arg1: memref<1x80xf32, #tpu.memory_space<vmem>>, %arg2: memref<1x8xf32, #tpu.memory_space<vmem>>, %arg3: memref<80x8xf32, #tpu.memory_space<vmem>>, %arg4: memref<1x8x128xf32, #tpu.memory_space<vmem>>) attributes {dimension_semantics = [#tpu.dimension_semantics<parallel>], iteration_bounds = array<i64: 1>, scalar_prefetch = 0 : i64, scratch_operands = 0 : i64, tpu.core_type = #tpu.core_type<tc>, window_params = [{transform_indices = @transform_0, window_bounds = array<i64: 1, 80>}, {transform_indices = @transform_1, window_bounds = array<i64: 1, 8>}, {pipeline_mode = #tpu.pipeline_mode<synchronous>, transform_indices = @transform_2, window_bounds = array<i64: 80, 8>}, {transform_indices = @transform_3, window_bounds = array<i64: 1, 8, 128>}]} {
    %c0 = arith.constant 0 : index
    %c0_0 = arith.constant 0 : index
    %0 = vector.load %arg1[%c0, %c0_0] : memref<1x80xf32, #tpu.memory_space<vmem>>, vector<1x80xf32>
    %c1_i32 = arith.constant 1 : i32
    %1 = arith.muli %arg0, %c1_i32 : i32
    %2 = tpu.iota {dimensions = array<i32: 0>} : vector<1x1xi32>
    %3 = vector.broadcast %1 : i32 to vector<1x1xi32>
    %4 = arith.addi %3, %2 : vector<1x1xi32>
    %c1_i32_1 = arith.constant 1 : i32
    %5 = vector.broadcast %c1_i32_1 : i32 to vector<1x1xi32>
    %6 = arith.cmpi slt, %4, %5 : vector<1x1xi32>
    %cst = arith.constant 0.000000e+00 : f32
    %7 = vector.shape_cast %6 : vector<1x1xi1> to vector<1x1xi1>
    %8 = vector.broadcast %7 : vector<1x1xi1> to vector<1x80xi1>
    %9 = vector.broadcast %cst : f32 to vector<1x80xf32>
    %10 = arith.select %8, %0, %9 : vector<1x80xi1>, vector<1x80xf32>
    %cst_2 = arith.constant dense<0xFF800000> : vector<1xf32>
    %11 = vector.multi_reduction <maximumf>, %10, %cst_2 [1] : vector<1x80xf32> to vector<1xf32>
    %12 = vector.shape_cast %11 : vector<1xf32> to vector<1x1xf32>
    %13 = vector.broadcast %12 : vector<1x1xf32> to vector<1x80xf32>
    %14 = arith.subf %10, %13 : vector<1x80xf32>
    %15 = math.exp %14 : vector<1x80xf32>
    %c0_3 = arith.constant 0 : index
    %c0_4 = arith.constant 0 : index
    %16 = vector.load %arg3[%c0_3, %c0_4] : memref<80x8xf32, #tpu.memory_space<vmem>>, vector<80x8xf32>
    %cst_5 = arith.constant dense<0.000000e+00> : vector<1x8xf32>
    %17 = tpu.matmul %15, %16, %cst_5 {dimension_numbers = #tpu.dot_dimension_numbers<[1], [0], [0], [1], [0, 0, 1, 1], [], []>} : vector<1x80xf32>, vector<80x8xf32>, vector<1x8xf32> -> vector<1x8xf32>
    %cst_6 = arith.constant dense<0.000000e+00> : vector<1x8xf32>
    %18 = tpu.matmul %10, %16, %cst_6 {dimension_numbers = #tpu.dot_dimension_numbers<[1], [0], [0], [1], [0, 0, 1, 1], [], []>} : vector<1x80xf32>, vector<80x8xf32>, vector<1x8xf32> -> vector<1x8xf32>
    %19 = math.log %17 : vector<1x8xf32>
    %20 = vector.broadcast %12 : vector<1x1xf32> to vector<1x8xf32>
    %21 = arith.addf %20, %19 : vector<1x8xf32>
    %c0_7 = arith.constant 0 : index
    %c0_8 = arith.constant 0 : index
    %22 = vector.load %arg2[%c0_7, %c0_8] : memref<1x8xf32, #tpu.memory_space<vmem>>, vector<1x8xf32>
    %cst_9 = arith.constant 0.000000e+00 : f32
    %23 = vector.shape_cast %6 : vector<1x1xi1> to vector<1x1xi1>
    %24 = vector.broadcast %23 : vector<1x1xi1> to vector<1x8xi1>
    %25 = vector.broadcast %cst_9 : f32 to vector<1x8xf32>
    %26 = arith.select %24, %22, %25 : vector<1x8xi1>, vector<1x8xf32>
    %27 = arith.subf %21, %26 : vector<1x8xf32>
    %cst_10 = arith.constant 1.000000e+01 : f32
    %28 = vector.broadcast %cst_10 : f32 to vector<1x8xf32>
    %29 = arith.mulf %28, %21 : vector<1x8xf32>
    %30 = arith.subf %29, %18 : vector<1x8xf32>
    %31 = arith.divf %27, %30 : vector<1x8xf32>
    %cst_11 = arith.constant 0.000000e+00 : f32
    %32 = vector.shape_cast %6 : vector<1x1xi1> to vector<1x1xi1>
    %33 = vector.broadcast %32 : vector<1x1xi1> to vector<1x8xi1>
    %34 = vector.broadcast %cst_11 : f32 to vector<1x8xf32>
    %35 = arith.select %33, %31, %34 : vector<1x8xi1>, vector<1x8xf32>
    %36 = vector.shape_cast %35 : vector<1x8xf32> to vector<1x1x8xf32>
    %cst_12 = arith.constant dense<0.000000e+00> : vector<1xf32>
    %37 = vector.multi_reduction <add>, %36, %cst_12 [1, 2] : vector<1x1x8xf32> to vector<1xf32>
    %38 = vector.shape_cast %37 : vector<1xf32> to vector<1x1x1xf32>
    %39 = vector.extract %38[0, 0, 0] : f32 from vector<1x1x1xf32>
    %40 = vector.broadcast %39 : f32 to vector<1x1xf32>
    %41 = tpu.iota {dimensions = array<i32: 1>} : vector<1x8x128xi32>
    %42 = tpu.iota {dimensions = array<i32: 2>} : vector<1x8x128xi32>
    %c0_i32 = arith.constant 0 : i32
    %43 = vector.broadcast %c0_i32 : i32 to vector<1x8x128xi32>
    %44 = arith.cmpi eq, %41, %43 : vector<1x8x128xi32>
    %c0_i32_13 = arith.constant 0 : i32
    %45 = vector.broadcast %c0_i32_13 : i32 to vector<1x8x128xi32>
    %46 = arith.cmpi eq, %42, %45 : vector<1x8x128xi32>
    %47 = arith.andi %44, %46 : vector<1x8x128xi1>
    %cst_14 = arith.constant 0.000000e+00 : f32
    %48 = vector.shape_cast %40 : vector<1x1xf32> to vector<1x1x1xf32>
    %49 = vector.broadcast %48 : vector<1x1x1xf32> to vector<1x8x128xf32>
    %50 = vector.broadcast %cst_14 : f32 to vector<1x8x128xf32>
    %51 = arith.select %47, %49, %50 : vector<1x8x128xi1>, vector<1x8x128xf32>
    %c0_15 = arith.constant 0 : index
    %c0_16 = arith.constant 0 : index
    %c0_17 = arith.constant 0 : index
    %52 = vector.load %arg4[%c0_15, %c0_16, %c0_17] : memref<1x8x128xf32, #tpu.memory_space<vmem>>, vector<1x8x128xf32>
    tpu.vector_store %arg4[%c0_15, %c0_16, %c0_17], %51 {strides = array<i32>} : memref<1x8x128xf32, #tpu.memory_space<vmem>>, vector<1x8x128xf32>,
    return
  }
  func.func @transform_0(%arg0: i32) -> (i32, i32) {
    %c0_i32 = arith.constant 0 : i32
    %c0_i32_0 = arith.constant 0 : i32
    return %arg0, %c0_i32 : i32, i32
  }
  func.func @transform_1(%arg0: i32) -> (i32, i32) {
    %c0_i32 = arith.constant 0 : i32
    %c0_i32_0 = arith.constant 0 : i32
    return %arg0, %c0_i32 : i32, i32
  }
  func.func @transform_2(%arg0: i32) -> (i32, i32) {
    %c0_i32 = arith.constant 0 : i32
    %c0_i32_0 = arith.constant 0 : i32
    %c0_i32_1 = arith.constant 0 : i32
    return %c0_i32, %c0_i32_0 : i32, i32
  }
  func.func @transform_3(%arg0: i32) -> (i32, i32, i32) {
    %c0_i32 = arith.constant 0 : i32
    %c0_i32_0 = arith.constant 0 : i32
    %c0_i32_1 = arith.constant 0 : i32
    return %arg0, %c0_i32, %c0_i32_0 : i32, i32, i32
  }
}

</mosaic_0001>

<bundles_post_ra>
// kernel: tpu_custom_call.1
= control target key start
LH: loop header
LB: loop body
LE: loop exit
PB: predicated region body
PF: predicated region fallthrough
CT: control target
= control target key end

     0   :  { %v16_v0 = vlaneseq  ;;  %s256_s0 = inlined_call_operand.vmem [shape: f32[1,80], index: 0, kind: input, shape index: {}]   ;;  %s257_s1 = inlined_call_operand.vmem [shape: f32[1,8], index: 1, kind: input, shape index: {}]   ;;  %s258_s2 = inlined_call_operand.vmem [shape: f32[80,8], index: 2, kind: input, shape index: {}]   ;;  %s259_s3 = inlined_call_operand.hbm [shape: f32[1,8,128], index: 3, kind: output, shape index: {}]  }
   0x1   :  { %v40_v1 = vld [vmem:[%s258_s2 + $0x48] sm:$0xff]  ;;  %v39_v2 = vld [vmem:[%s258_s2 + $0x40] sm:$0xff] }
   0x2   :  { %51 = vmatpush.msra.mxu0 %v40_v1  ;;  %74 = vmatpush.msra.mxu1 %v40_v1 }
   0x3   :  { %8 = vsyncpa [#allocation3], 0  ;;  %v15_v3 = vld [vmem:[%s256_s0] sm:$0x1]  ;;  %v215_v4 = vshrl.u32 %v16_v0, 7  ;;  %v38_v5 = vld [vmem:[%s258_s2 + $0x38] sm:$0xff] }
   0x4   :  { %vm24_vm0 = vcmask 647168   ;;  %52 = vmatpush.msra.mxu0 %v39_v2  ;;  %75 = vmatpush.msra.mxu1 %v39_v2  ;;  %v37_v6 = vld [vmem:[%s258_s2 + $0x30] sm:$0xff]  ;;  %v36_v9 = vld [vmem:[%s258_s2 + $0x28] sm:$0xff]  ;;  %v35_v10 = vld [vmem:[%s258_s2 + $0x20] sm:$0xff]  ;;  %vm41_vm2 = vcmask 654336   ;;  %vm112_vm7 = vcmask 57344  }
   0x5   :  { %vm20_vm1 = vcmp.lt.s32.totalorder %v215_v4, 1  ;;  %v34_v11 = vld [vmem:[%s258_s2 + $0x18] sm:$0xff]  ;;  %v33_v12 = vld [vmem:[%s258_s2 + $0x10] sm:$0xff]  ;;  %v32_v13 = vld [vmem:[%s258_s2 + $0x8] sm:$0xff]  ;;  %v124_v49 = vand.u32 127, %v16_v0  ;;  %vm125_vm8 = vcmp.eq.s32.totalorder %v215_v4, 0 }
   0x6   :  { %v23_v7 = vsel %vm20_vm1, %v15_v3, 0.0  ;;  %53 = vmatpush.msra.mxu0 %v38_v5  ;;  %76 = vmatpush.msra.mxu1 %v38_v5  ;;  %v31_v14 = vld [vmem:[%s258_s2] sm:$0xff]  ;;  %s138_s10 = sshll.u32 %s259_s3, 4  ;;  %s139_s10 = int_to_ptr.hbm [resolvable:$true] %s138_s10 }
   0x7   :  { %v25_v8 = vsel %vm24_vm0, %v23_v7, -inf  ;;  %v91_v29 = vld [vmem:[%s257_s1] sm:$0x1]  ;;  %vm126_vm9 = vcmp.eq.s32.totalorder %v124_v49, 0  ;;  %s184_s1 = smov [#allocation2]  }
   0x8   :  { %26 = vmax.xlane.f32.xlu0 %v25_v8  ;;  %54 = vmatpush.msra.mxu0 %v37_v6  ;;  %v92_v33 = vsel %vm20_vm1, %v91_v29, 0.0  ;;  %s136_s7 = sshll.u32 %s184_s1, 4  ;;  %vm127_vm10 = vmand %vm125_vm8, %vm126_vm9  ;;  %s137_s7 = int_to_ptr.vmem [resolvable:$true] %s136_s7 }
   0x9   :  { %77 = vmatpush.msra.mxu1 %v37_v6 }
   0xa   :  { %55 = vmatpush.msra.mxu0 %v36_v9 }
   0xb   :  { %78 = vmatpush.msra.mxu1 %v36_v9 }
   0xc   :  { %56 = vmatpush.msra.mxu0 %v35_v10 }
   0xd   :  { %79 = vmatpush.msra.mxu1 %v35_v10 }
   0xe   :  { %57 = vmatpush.msra.mxu0 %v34_v11 }
   0xf   :  { %80 = vmatpush.msra.mxu1 %v34_v11 }
  0x10   :  { %58 = vmatpush.msra.mxu0 %v33_v12 }
  0x11   :  { %81 = vmatpush.msra.mxu1 %v33_v12 }
  0x12   :  { %59 = vmatpush.msra.mxu0 %v32_v13 }
  0x13   :  { %82 = vmatpush.msra.mxu1 %v32_v13 }
  0x14   :  { %60 = vmatpush.msra.mxu0 %v31_v14 }
  0x15   :  { %83 = vmatpush.msra.mxu1 %v31_v14 }
  0x16   :  { %148 = vmatmul.msk.f32.vlgmr.msra.gmra.mxu1 %vm41_vm2, %v23_v7 }
  0x7b   :  { %v27_v15 = vpop.xlane.xlu0 %26 }
  0x7c   :  { %v28_v16 = vsub.f32 %v23_v7, %v27_v15 }
  0x7e   :  { %v29_v17 = vmul.f32 1.442695, %v28_v16 }
  0x80   :  { %152 = vpow2.f32 %v29_v17 }
  0x86   :  { %v153_v18 = vpop.eup %152 }
  0x87   :  { %147 = vmatmul.msk.f32.vlgmr.msra.gmra.mxu0 %vm41_vm2, %v153_v18 }
  0x93   :  { %v85_v23 = vpop.f32.mrf.mxu1 }
 0x104   :  { %v62_v19 = vpop.f32.mrf.mxu0 }
 0x105   :  { %154 = vlog2.f32 %v62_v19 }
 0x10b   :  { %v155_v20 = vpop.eup %154 }
 0x10c   :  { %v89_v21 = vmul.f32 0.6931472, %v155_v20 }
 0x10e   :  { %v90_v22 = vadd.f32 %v89_v21, %v27_v15 }
 0x110   :  { %v94_v24 = vmul.f32 10.0, %v90_v22  ;;  %v93_v36 = vsub.f32 %v90_v22, %v92_v33 }
 0x112   :  { %v95_v25 = vsub.f32 %v94_v24, %v85_v23 }
 0x114   :  { %156 = vrcp.f32 %v95_v25  ;;  %v107_v30 = vand.u32 2147483648, %v95_v25  ;;  %v105_v32 = vand.u32 2147483647, %v95_v25  ;;  %vm101_vm4 = vweird.f32 %v95_v25 }
 0x116   :  { %v108_v35 = vor.u32 1.1754944e-38, %v107_v30  ;;  %vm106_vm6 = vcmp.eq.f32.partialorder %v105_v32, 8.507059e+37 }
 0x11a   :  { %v157_v26 = vpop.eup %156 }
 0x11b   :  { %v97_v27 = vmul.f32 %v157_v26, %v95_v25  ;;  %vm102_vm3 = vweird.f32 %v157_v26 }
 0x11c   :  { %vm103_vm5 = vmor %vm101_vm4, %vm102_vm3 }
 0x11d   :  { %v98_v28 = vsub.f32 1.0, %v97_v27 }
 0x11f   :  { %v99_v31 = vmul.f32 %v157_v26, %v98_v28 }
 0x121   :  { %v100_v34 = vadd.f32 %v157_v26, %v99_v31 }
 0x123   :  { %v104_v37 = vsel %vm103_vm5, %v157_v26, %v100_v34 }
 0x124   :  { %v109_v38 = vsel %vm106_vm6, %v108_v35, %v104_v37 }
 0x125   :  { %v110_v39 = vmul.f32 %v109_v38, %v93_v36 }
 0x127   :  { %v111_v40 = vsel %vm20_vm1, %v110_v39, 0.0 }
 0x128   :  { %v113_v41 = vsel %vm112_vm7, %v111_v40, 0.0 }
 0x129   :  { %114 = vadd.xlane.f32.xlu0 %v113_v41 }
 0x19c   :  { %v115_v42 = vpop.xlane.xlu0 %114 }
 0x19d   :  { %v116_v43 = vrot.slane %v115_v42, 4 }
 0x19f   :  { %v117_v44 = vadd.f32 %v116_v43, %v115_v42 }
 0x1a1   :  { %v118_v45 = vrot.slane %v117_v44, 2 }
 0x1a3   :  { %v119_v46 = vadd.f32 %v118_v45, %v117_v44 }
 0x1a5   :  { %v120_v47 = vrot.slane %v119_v46, 1 }
 0x1a7   :  { %v121_v48 = vadd.f32 %v120_v47, %v119_v46 }
 0x1a9   :  { %149 = vpush %v121_v48 }
 0x1da   :  { %s150_s11 = spop %149 }
 0x1db   :  { %v128_v50 = vstv %s150_s11 }
 0x1dc   :  { %v129_v51 = vsel %vm127_vm10, %v128_v50, 0.0 }
 0x1dd   :  { %130 = vst [vmem:[#allocation2] sm:$0xff] %v129_v51 }
 0x1de   :  { %141 = dma.vmem_to_hbm [thread:$0]  %s137_s7, 128, %s139_s10, [#allocation3]  }
 0x1df   :  { %182 = dma.done.wait [#allocation3], 128  }
 0x1e0   :  { %183 = vsyncadd [#allocation3], 4294967168 }
 0x1e1   :  { %146 = vsyncpa [#allocation3], 1 }

</bundles_post_ra>
